<compile_context>
chip_gen: v7x
topology: tpu7x:2x2x1
jax: 0.10.0
libtpu: 0.0.40
codegen_flags: <defaults>
</compile_context>

<pallas_src>
import functools
import math

import jax
import jax.numpy as jnp
from jax.experimental import pallas as pl
from jax.experimental.pallas import tpu as pltpu

# Above the 16/32 MiB scoped defaults, with headroom vs. v7x's 64 MiB physical VMEM.
_VMEM_LIMIT = 48 * 1024 * 1024


# ----------------------------------------------------------------------------
# Row-tiled linear kernel: out = x @ w + b   (w, b stay VMEM-resident)
# ----------------------------------------------------------------------------
def _linear_kernel(x_ref, w_ref, b_ref, o_ref):
    o_ref[...] = (
        jnp.dot(x_ref[...], w_ref[...], preferred_element_type=jnp.float32)
        + b_ref[...]
    ).astype(o_ref.dtype)


def linear(x, w, b, *, block_m=256):
    """out = x @ w + b; rows tiled in block_m chunks, bf16 MXU operands, f32 acc."""
    M, K = x.shape
    K2, N = w.shape
    assert K == K2
    x = x.astype(jnp.bfloat16)
    w = w.astype(jnp.bfloat16)
    b = b.reshape(1, N).astype(jnp.float32)

    if M <= block_m:
        bm, Mp = M, M
    else:
        bm = block_m
        Mp = ((M + bm - 1) // bm) * bm
        if Mp != M:
            x = jnp.pad(x, ((0, Mp - M), (0, 0)))

    out = pl.pallas_call(
        _linear_kernel,
        grid=(Mp // bm,),
        in_specs=[
            pl.BlockSpec((bm, K), lambda i: (i, 0)),
            pl.BlockSpec((K, N), lambda i: (0, 0)),
            pl.BlockSpec((1, N), lambda i: (0, 0)),
        ],
        out_specs=pl.BlockSpec((bm, N), lambda i: (i, 0)),
        out_shape=jax.ShapeDtypeStruct((Mp, N), jnp.float32),
        compiler_params=pltpu.CompilerParams(
            dimension_semantics=("parallel",),
            vmem_limit_bytes=_VMEM_LIMIT,
        ),
    )(x, w, b)
    return out[:M] if Mp != M else out


# ----------------------------------------------------------------------------
# Fused encoder stack: grid = (batch blocks, layers); activations stay in VMEM.
# ----------------------------------------------------------------------------
def _layernorm(x, gamma, beta, eps=1e-5):
    mu = jnp.mean(x, axis=-1, keepdims=True)
    var = jnp.mean((x - mu) ** 2, axis=-1, keepdims=True)
    return (x - mu) * jax.lax.rsqrt(var + eps) * gamma + beta


def _encoder_stack_kernel(
    num_heads,
    x_ref,
    wqkv_ref, bqkv_ref, wo_ref, bo_ref,
    g1_ref, be1_ref, g2_ref, be2_ref,
    w1_ref, b1_ref, w2_ref, b2_ref,
    o_ref,
    acc_ref,
):
    layer = pl.program_id(1)
    Bt, S, D = acc_ref.shape
    dh = D // num_heads
    scale = 1.0 / math.sqrt(dh)

    # Layer 0: load the token block into the VMEM-resident f32 carry.
    @pl.when(layer == 0)
    def _():
        acc_ref[...] = x_ref[...].astype(jnp.float32)

    x = acc_ref[...].reshape(Bt * S, D)          # (M, D) f32 residual stream

    # ---------- Multi-head self-attention (pre-norm), fused QKV ----------
    h = _layernorm(x, g1_ref[0], be1_ref[0]).astype(jnp.bfloat16)
    qkv = (
        jnp.dot(h, wqkv_ref[0], preferred_element_type=jnp.float32)
        + bqkv_ref[0]
    ).reshape(Bt, S, 3 * D)                      # one MXU pass, N = 3D

    head_ctx = []
    for hh in range(num_heads):                  # short static head loop;
        off = hh * dh                            # batch dim handled by einsum
        qh = qkv[:, :, off:off + dh].astype(jnp.bfloat16)
        kh = qkv[:, :, D + off:D + off + dh].astype(jnp.bfloat16)
        vh = qkv[:, :, 2 * D + off:2 * D + off + dh].astype(jnp.bfloat16)
        s = jnp.einsum("bqd,bkd->bqk", qh, kh,
                       preferred_element_type=jnp.float32) * scale
        m = jnp.max(s, axis=-1, keepdims=True)
        e = jnp.exp(s - m)
        p = e * pl.reciprocal(jnp.sum(e, axis=-1, keepdims=True), approx=True)
        head_ctx.append(
            jnp.einsum("bqk,bkd->bqd", p.astype(jnp.bfloat16), vh,
                       preferred_element_type=jnp.float32))
    ctx = jnp.concatenate(head_ctx, axis=-1).reshape(Bt * S, D)
    attn = (
        jnp.dot(ctx.astype(jnp.bfloat16), wo_ref[0],
                preferred_element_type=jnp.float32)
        + bo_ref[0]
    )
    x = x + attn

    # ---------- MLP (pre-norm) ----------
    h2 = _layernorm(x, g2_ref[0], be2_ref[0]).astype(jnp.bfloat16)
    ff = jnp.dot(h2, w1_ref[0], preferred_element_type=jnp.float32) + b1_ref[0]
    # TODO(synk): PyTorch nn.GELU defaults to exact erf; tanh approximation used
    # here (EUP-friendly), ~1e-3 relative difference.
    ff = jax.nn.gelu(ff, approximate=True).astype(jnp.bfloat16)
    y = jnp.dot(ff, w2_ref[0], preferred_element_type=jnp.float32) + b2_ref[0]
    x = x + y

    acc_ref[...] = x.reshape(Bt, S, D)

    @pl.when(layer == pl.num_programs(1) - 1)
    def _():
        o_ref[...] = acc_ref[...].astype(o_ref.dtype)


def _pick_block_batch(B, S, target_rows=512):
    """Batch elements per grid step: aim for ~target_rows matmul rows while
    keeping >= 2 parallel grid steps (v7x has 2 TensorCores)."""
    bt = max(1, min(B, target_rows // max(S, 1)))
    while B % bt != 0:
        bt -= 1
    while bt > 1 and B // bt < 2:
        bt -= 1
        while B % bt != 0:
            bt -= 1
    return bt


def encoder_stack(x, sp, num_heads):
    B, S, D = x.shape
    L = sp["wqkv"].shape[0]
    d_ff = sp["w1"].shape[-1]
    Bt = _pick_block_batch(B, S)

    tok_spec = pl.BlockSpec((Bt, S, D), lambda b, l: (b, 0, 0))

    def wspec(r, c):
        return pl.BlockSpec((1, r, c), lambda b, l: (l, 0, 0))

    in_specs = [
        tok_spec,
        wspec(D, 3 * D), wspec(1, 3 * D),     # fused QKV weight / bias
        wspec(D, D), wspec(1, D),             # Wo, bo
        wspec(1, D), wspec(1, D),             # LN1 gamma, beta
        wspec(1, D), wspec(1, D),             # LN2 gamma, beta
        wspec(D, d_ff), wspec(1, d_ff),       # W1, b1
        wspec(d_ff, D), wspec(1, D),          # W2, b2
    ]

    kernel = functools.partial(_encoder_stack_kernel, num_heads)
    return pl.pallas_call(
        kernel,
        grid=(B // Bt, L),
        in_specs=in_specs,
        out_specs=pl.BlockSpec((Bt, S, D), lambda b, l: (b, 0, 0)),
        out_shape=jax.ShapeDtypeStruct((B, S, D), jnp.float32),
        scratch_shapes=[pltpu.VMEM((Bt, S, D), jnp.float32)],
        compiler_params=pltpu.CompilerParams(
            dimension_semantics=("parallel", "arbitrary"),
            vmem_limit_bytes=_VMEM_LIMIT,
        ),
    )(
        x,
        sp["wqkv"], sp["bqkv"], sp["wo"], sp["bo"],
        sp["g1"], sp["be1"], sp["g2"], sp["be2"],
        sp["w1"], sp["b1"], sp["w2"], sp["b2"],
    )


# ----------------------------------------------------------------------------
# Parameter initialization (deterministic, synthetic; weights stored bf16)
# ----------------------------------------------------------------------------
def init_params(key, *, in_channels, patch_size, d_model, d_ff, num_layers,
                n_cls, num_patches):
    def nrm(k, shape, scale=0.02):
        return scale * jax.random.normal(k, shape, dtype=jnp.float32)

    D = d_model
    n_cls_pad = ((n_cls + 127) // 128) * 128    # lane-dense classifier output

    keys = jax.random.split(key, 4 + num_layers)
    head_w = jnp.pad(nrm(keys[3], (D, n_cls)), ((0, 0), (0, n_cls_pad - n_cls)))

    params = {
        "patch_w": nrm(keys[0], (in_channels * patch_size ** 2, D)).astype(jnp.bfloat16),
        "patch_b": jnp.zeros((D,), jnp.float32),
        "cls_token": nrm(keys[1], (1, 1, D)),
        "pos_emb": nrm(keys[2], (1, num_patches + 1, D)),
        "head_w": head_w.astype(jnp.bfloat16),
        "head_b": jnp.zeros((n_cls_pad,), jnp.float32),
        "n_cls": n_cls,
    }

    layers = []
    for li in range(num_layers):
        lk = jax.random.split(keys[4 + li], 6)
        wq, wk, wv = nrm(lk[0], (D, D)), nrm(lk[1], (D, D)), nrm(lk[2], (D, D))
        layers.append({
            "wqkv": jnp.concatenate([wq, wk, wv], axis=1).astype(jnp.bfloat16),
            "bqkv": jnp.zeros((1, 3 * D), jnp.float32),
            "wo": nrm(lk[3], (D, D)).astype(jnp.bfloat16),
            "bo": jnp.zeros((1, D), jnp.float32),
            "g1": jnp.ones((1, D), jnp.float32),
            "be1": jnp.zeros((1, D), jnp.float32),
            "g2": jnp.ones((1, D), jnp.float32),
            "be2": jnp.zeros((1, D), jnp.float32),
            "w1": nrm(lk[4], (D, d_ff)).astype(jnp.bfloat16),
            "b1": jnp.zeros((1, d_ff), jnp.float32),
            "w2": nrm(lk[5], (d_ff, D)).astype(jnp.bfloat16),
            "b2": jnp.zeros((1, D), jnp.float32),
        })
    # Stack per-layer params along a leading layer axis so the whole encoder
    # runs in one pallas_call (no HBM activation round-trip between layers).
    params["stack"] = {k: jnp.stack([lp[k] for lp in layers], axis=0)
                       for k in layers[0]}
    return params


# ----------------------------------------------------------------------------
# Full forward pass (glue in JAX, hot loops in Pallas)
# ----------------------------------------------------------------------------
def vit_forward(x_img, params, cfg):
    B, C, H, W = x_img.shape
    P = cfg["patch_size"]
    D = cfg["d_model"]
    Hp, Wp = H // P, W // P
    N = Hp * Wp

    # Patch embedding: Conv2d(kernel=stride=P) == per-patch flatten + matmul.
    patches = (
        x_img.reshape(B, C, Hp, P, Wp, P)
        .transpose(0, 2, 4, 1, 3, 5)            # (B, Hp, Wp, C, P, P), row-major HW
        .reshape(B * N, C * P * P)
    )
    tokens = linear(patches, params["patch_w"], params["patch_b"]).reshape(B, N, D)

    # Prepend CLS token, add positional embeddings.
    cls = jnp.broadcast_to(params["cls_token"], (B, 1, D))
    x = jnp.concatenate([cls, tokens], axis=1)            # (B, N+1, D)
    x = x + params["pos_emb"][:, : N + 1]
    # TODO(synk): dropout (p_drop) is identity in eval mode; not applied here.

    x = encoder_stack(x, params["stack"], cfg["num_heads"])

    cls_out = x[:, 0]                                     # (B, D)
    logits = linear(cls_out, params["head_w"], params["head_b"])
    return logits[:, : params["n_cls"]]


if __name__ == "__main__":
    cfg = dict(
        image_size=(16, 16),
        patch_size=8,
        d_model=32,
        d_ff=64,
        num_layers=2,
        n_cls=10,
        num_heads=4,
        in_channels=4,
    )
    B = 2
    H, W = cfg["image_size"]
    num_patches = (H // cfg["patch_size"]) * (W // cfg["patch_size"])

    key = jax.random.PRNGKey(0)
    k_x, k_p = jax.random.split(key)
    x_img = jax.random.normal(k_x, (B, cfg["in_channels"], H, W), dtype=jnp.float32)
    params = init_params(
        k_p,
        in_channels=cfg["in_channels"],
        patch_size=cfg["patch_size"],
        d_model=cfg["d_model"],
        d_ff=cfg["d_ff"],
        num_layers=cfg["num_layers"],
        n_cls=cfg["n_cls"],
        num_patches=num_patches,
    )

    logits = vit_forward(x_img, params, cfg)
    jax.block_until_ready(logits)
    assert logits.shape == (B, cfg["n_cls"])
    print("KERNEL_OK")
</pallas_src>

<mosaic_0001>
module attributes {stable_mosaic.version = 11 : i64} {
  func.func @_linear_kernel(%arg0: i32, %arg1: memref<8x256xbf16, #tpu.memory_space<vmem>>, %arg2: memref<256x32xbf16, #tpu.memory_space<vmem>>, %arg3: memref<1x32xf32, #tpu.memory_space<vmem>>, %arg4: memref<8x32xf32, #tpu.memory_space<vmem>>) attributes {dimension_semantics = [#tpu.dimension_semantics<parallel>], iteration_bounds = array<i64: 1>, scalar_prefetch = 0 : i64, scratch_operands = 0 : i64, tpu.core_type = #tpu.core_type<tc>, window_params = [{transform_indices = @transform_0, window_bounds = array<i64: 8, 256>}, {pipeline_mode = #tpu.pipeline_mode<synchronous>, transform_indices = @transform_1, window_bounds = array<i64: 256, 32>}, {pipeline_mode = #tpu.pipeline_mode<synchronous>, transform_indices = @transform_2, window_bounds = array<i64: 1, 32>}, {transform_indices = @transform_3, window_bounds = array<i64: 8, 32>}]} {
    %c0 = arith.constant 0 : index
    %c0_0 = arith.constant 0 : index
    %0 = vector.load %arg1[%c0, %c0_0] : memref<8x256xbf16, #tpu.memory_space<vmem>>, vector<8x256xbf16>
    %c0_1 = arith.constant 0 : index
    %c0_2 = arith.constant 0 : index
    %1 = vector.load %arg2[%c0_1, %c0_2] : memref<256x32xbf16, #tpu.memory_space<vmem>>, vector<256x32xbf16>
    %cst = arith.constant dense<0.000000e+00> : vector<8x32xf32>
    %2 = tpu.matmul %0, %1, %cst {dimension_numbers = #tpu.dot_dimension_numbers<[1], [0], [0], [1], [0, 0, 1, 1], [], []>} : vector<8x256xbf16>, vector<256x32xbf16>, vector<8x32xf32> -> vector<8x32xf32>
    %c0_3 = arith.constant 0 : index
    %c0_4 = arith.constant 0 : index
    %3 = vector.load %arg3[%c0_3, %c0_4] : memref<1x32xf32, #tpu.memory_space<vmem>>, vector<1x32xf32>
    %4 = vector.broadcast %3 : vector<1x32xf32> to vector<8x32xf32>
    %5 = arith.addf %2, %4 : vector<8x32xf32>
    %c0_5 = arith.constant 0 : index
    %c0_6 = arith.constant 0 : index
    %6 = vector.load %arg4[%c0_5, %c0_6] : memref<8x32xf32, #tpu.memory_space<vmem>>, vector<8x32xf32>
    tpu.vector_store %arg4[%c0_5, %c0_6], %5 {strides = array<i32>} : memref<8x32xf32, #tpu.memory_space<vmem>>, vector<8x32xf32>,
    return
  }
  func.func @transform_0(%arg0: i32) -> (i32, i32) {
    %c0_i32 = arith.constant 0 : i32
    %c0_i32_0 = arith.constant 0 : i32
    return %arg0, %c0_i32 : i32, i32
  }
  func.func @transform_1(%arg0: i32) -> (i32, i32) {
    %c0_i32 = arith.constant 0 : i32
    %c0_i32_0 = arith.constant 0 : i32
    %c0_i32_1 = arith.constant 0 : i32
    return %c0_i32, %c0_i32_0 : i32, i32
  }
  func.func @transform_2(%arg0: i32) -> (i32, i32) {
    %c0_i32 = arith.constant 0 : i32
    %c0_i32_0 = arith.constant 0 : i32
    %c0_i32_1 = arith.constant 0 : i32
    return %c0_i32, %c0_i32_0 : i32, i32
  }
  func.func @transform_3(%arg0: i32) -> (i32, i32) {
    %c0_i32 = arith.constant 0 : i32
    %c0_i32_0 = arith.constant 0 : i32
    return %arg0, %c0_i32 : i32, i32
  }
}

</mosaic_0001>

<bundles_post_ra>
// kernel: tpu_custom_call.1
= control target key start
LH: loop header
LB: loop body
LE: loop exit
PB: predicated region body
PF: predicated region fallthrough
CT: control target
= control target key end

     0   :  { %s386_s0 = inlined_call_operand.vmem [shape: bf16[8,256], index: 0, kind: input, shape index: {}]   ;;  %s387_s1 = inlined_call_operand.vmem [shape: bf16[256,32], index: 1, kind: input, shape index: {}]   ;;  %s388_s2 = inlined_call_operand.vmem [shape: f32[1,32], index: 2, kind: input, shape index: {}]   ;;  %s389_s3 = inlined_call_operand.hbm [shape: f32[8,32], index: 3, kind: output, shape index: {}]  }
   0x1   :  { %v257_v0 = vld [vmem:[%s387_s1 + $0x40] sm:$0xff]   ;;  %v259_v2 = vld [vmem:[%s387_s1 + $0x48] sm:$0xff]   ;;  %v261_v4 = vld [vmem:[%s387_s1 + $0x50] sm:$0xff]  }
   0x2   :  { %v258_v1 = vld [vmem:[%s387_s1] sm:$0xff]   ;;  %234 = vmatprep.subr.bf16.mxu0 %v257_v0  ;;  %v260_v3 = vld [vmem:[%s387_s1 + $0x8] sm:$0xff]   ;;  %v262_v5 = vld [vmem:[%s387_s1 + $0x10] sm:$0xff]  }
   0x3   :  { %235 = vmatpush3.bf16.msra.mxu0 %v258_v1  ;;  %v263_v6 = vld [vmem:[%s387_s1 + $0x58] sm:$0xff]   ;;  %v265_v8 = vld [vmem:[%s387_s1 + $0x60] sm:$0xff]   ;;  %v267_v10 = vld [vmem:[%s387_s1 + $0x68] sm:$0xff]  }
   0x4   :  { %236 = vmatprep.subr.bf16.mxu0 %v259_v2  ;;  %v264_v7 = vld [vmem:[%s387_s1 + $0x18] sm:$0xff]   ;;  %v266_v9 = vld [vmem:[%s387_s1 + $0x20] sm:$0xff]  }
   0x5   :  { %v16_v11 = vld [vmem:[%s386_s0] sm:$0xff] }
   0x7   :  { %237 = vmatpush3.bf16.msra.mxu0 %v260_v3 }
   0x8   :  { %238 = vmatprep.subr.bf16.mxu0 %v261_v4 }
   0xb   :  { %239 = vmatpush3.bf16.msra.mxu0 %v262_v5 }
   0xc   :  { %240 = vmatprep.subr.bf16.mxu0 %v263_v6 }
   0xf   :  { %241 = vmatpush3.bf16.msra.mxu0 %v264_v7 }
  0x10   :  { %242 = vmatprep.subr.bf16.mxu0 %v265_v8 }
  0x11   :  { %8 = vsyncpa [#allocation3], 0  ;;  %v217_v12 = vcombine.high %v16_v11, %v16_v11  ;;  %v268_v13 = vld [vmem:[%s387_s1 + $0x28] sm:$0xff]   ;;  %v269_v14 = vld [vmem:[%s387_s1 + $0x70] sm:$0xff]   ;;  %v216_v18 = vcombine.low %v16_v11, %v16_v11  ;;  %s299_s20 = smov [#allocation2]   ;;  %vm199_vm0 = vcmask 261120  }
  0x12   :  { %v270_v15 = vld [vmem:[%s387_s1 + $0x30] sm:$0xff]   ;;  %v271_v16 = vld [vmem:[%s387_s1 + $0x78] sm:$0xff]   ;;  %v215_v20 = vld [vmem:[%s388_s2] ss:$0 sm:$0xff]  ;;  %s207_s21 = sshll.u32 %s299_s20, 4  ;;  %s208_s21 = int_to_ptr.vmem [resolvable:$true] %s207_s21 }
  0x13   :  { %243 = vmatpush3.bf16.msra.mxu0 %v266_v9  ;;  %191 = vmatprep.mubr.bf16.mxu0 %v217_v12  ;;  %v272_v17 = vld [vmem:[%s387_s1 + $0x38] sm:$0xff]   ;;  %s275_s1 = scalar_lea.vmem %s208_s21, 128  ;;  %p280_p1 = scmp.lt.s32.totalorder %s208_s21, %s208_s21 }
  0x14   :  { %244 = vmatprep.subr.bf16.mxu0 %v267_v10  ;;  %p276_p0 = scmp.ne.s32.totalorder %s208_s21, %s275_s1  ;;  %p281_p2 = scmp.lt.s32.totalorder %s275_s1, %s275_s1 }
  0x16   :  { %p282_p3 = por %p281_p2, %p280_p1 }
  0x17   :  { %245 = vmatpush3.bf16.msra.mxu0 %v268_v13 }
  0x18   :  { %246 = vmatprep.subr.bf16.mxu0 %v269_v14  ;;  %p283_p4 = pnand %p282_p3, %p276_p0 }
  0x1b   :  { %247 = vmatpush3.bf16.msra.mxu0 %v270_v15 }
  0x1c   :  { %248 = vmatprep.subr.bf16.mxu0 %v271_v16 }
  0x1f   :  { %249 = vmatpush3.bf16.msra.mxu0 %v272_v17 }
  0x22   :  { %192 = vmatmul.mubr.bf16.vlgmr.msra.gmra.mrb[0].mxu0 %v216_v18 }
  0xf5   :  { %v250_v19 = vpop.f32.mrb[0].mxu0 }
  0xf6   :  { %v251_v21 = vpop.f32.mrb[1].mxu0 }
  0xf7   :  { %v252_v22 = vadd.f32 %v251_v21, %v250_v19  ;;  %v253_v23 = vpop.f32.mrb[2].mxu0 }
  0xf8   :  { %v254_v24 = vpop.f32.mrb[3].mxu0 }
  0xf9   :  { %v194_v25 = vadd.f32 %v252_v22, %v215_v20 }
  0xfb   :  { %200 = vst.msk [vmem:[#allocation2] sm:$0xff] %vm199_vm0, %v194_v25 }
  0xfc   :  { %286 = shalt.err (!%p283_p4)
}
  0xfd   :  { %s287_s2 = scalar_lea.hbm %s389_s3, 128 }
  0xfe   :  { %p288_p5 = scmp.ne.s32.totalorder %s389_s3, %s287_s2  ;;  %p291_p6 = scmp.lt.u32.totalorder %s287_s2, %s389_s3 }
 0x100   :  { %p293_p7 = pnand %p291_p6, %p288_p5 }
 0x102   :  { %296 = shalt.err (!%p293_p7)
}
 0x103   :  { %210 = dma.vmem_to_hbm [thread:$0]  %s208_s21, 128, %s389_s3, [#allocation3]  }
 0x104   :  { %297 = dma.done.wait [#allocation3], 128  }
 0x105   :  { %298 = vsyncadd [#allocation3], 4294967168 }
 0x106   :  { %214 = vsyncpa [#allocation3], 1 }

</bundles_post_ra>
